<compile_context>
chip_gen: v5e
topology: v5e:2x2
jax: 0.10.0
libtpu: 0.0.40
codegen_flags: <defaults>
</compile_context>

<pallas_src>
import functools

import jax
import jax.numpy as jnp
from jax.experimental import pallas as pl
from jax.experimental.pallas import tpu as pltpu


def _choose_tiling(n):
    """Return (n_padded, block_q): full-sequence tile for moderate N, else 256-row
    query tiles over a 256-padded sequence (keeps blocks (8,128)-friendly)."""
    if n <= 512:
        return n, n
    bq = 256
    n_pad = -(-n // bq) * bq
    return n_pad, bq


def _vmem_limit_bytes():
    """~75% of per-core VMEM (leave headroom for double buffers / compiler scratch)."""
    try:
        cap = int(pltpu.get_tpu_info().vmem_capacity_bytes)
    except Exception:
        cap = 64 * 1024 * 1024  # conservative (v7x per-core size)
    return (cap * 3) // 4


def _attention_kernel(x_ref, wq_ref, wkv_ref, wo_ref, bo_ref, o_ref,
                      kv_ref, oh_ref, *,
                      heads, dim_head, block_q, n_valid, n_padded):
    # x_ref:   (1, N_pad, C)   full sequence for this batch (constant over qi -> one DMA)
    # wq_ref:  (C, H*D)        lane-dense Q weight, softmax scale pre-folded
    # wkv_ref: (C, 2*H*D)      lane-dense fused K|V weight
    # wo_ref:  (H*D, C)        lane-dense output projection weight
    # bo_ref:  (1, C)          output projection bias (f32)
    # o_ref:   (1, block_q, C) output tile
    # kv_ref:  (N_pad, 2*H*D)  VMEM scratch: per-batch K|V projection (persists over qi)
    # oh_ref:  (block_q, H*D)  VMEM scratch: merged head outputs for this query tile
    H, D = heads, dim_head
    HD = H * D
    cdt = x_ref.dtype  # MXU input dtype = input dtype (no blanket f32 upcast)
    qi = pl.program_id(1)

    # ---- K/V projection: once per batch, result persists in VMEM across query tiles.
    @pl.when(qi == 0)
    def _project_kv():
        kv = jnp.dot(x_ref[0], wkv_ref[...],
                     preferred_element_type=jnp.float32)      # (N_pad, 2HD), f32 acc
        kv_ref[...] = kv.astype(cdt)                          # cast once

    # ---- Q projection for this query tile (scale already folded into wq).
    if block_q == n_padded:
        xq = x_ref[0]                                         # (N_pad, C)
    else:
        q_start = pl.multiple_of(qi * block_q, block_q)
        xq = x_ref[0, pl.ds(q_start, block_q), :]             # (tq, C)
    q_all = jnp.dot(xq, wq_ref[...],
                    preferred_element_type=jnp.float32).astype(cdt)   # (tq, HD)

    # ---- Per-head attention; each head's (tq, D) result goes straight into oh_ref.
    # Only a (tq, N_pad) score block is ever live (never (H, N, N)).
    # TODO(synk): for large H (>= ~12) switch to lax.fori_loop(unroll=True) over head
    #   pairs (2*D = 128 lanes per MXU issue) to bound vreg live ranges / code size.
    for h in range(H):
        q_h = q_all[:, h * D:(h + 1) * D]                     # (tq, D)
        k_h = kv_ref[:, h * D:(h + 1) * D]                    # (N_pad, D) static ref slice
        v_h = kv_ref[:, HD + h * D: HD + (h + 1) * D]         # (N_pad, D)

        s = jnp.einsum('qd,nd->qn', q_h, k_h,
                       preferred_element_type=jnp.float32)    # (tq, N_pad)
        if n_padded > n_valid:
            key_idx = jax.lax.broadcasted_iota(jnp.int32, s.shape, 1)
            s = jnp.where(key_idx < n_valid, s, jnp.float32(-1e30))
        m = jnp.max(s, axis=-1, keepdims=True)
        e = jnp.exp(s - m)
        denom = jnp.sum(e, axis=-1, keepdims=True)
        p = (e * pl.reciprocal(denom, approx=True)).astype(cdt)   # softmax, f32 stats

        oh_ref[:, h * D:(h + 1) * D] = jnp.dot(
            p, v_h, preferred_element_type=jnp.float32).astype(cdt)

    # ---- Output projection: one lane-dense (tq, HD) @ (HD, C) + bias.
    y = jnp.dot(oh_ref[...], wo_ref[...], preferred_element_type=jnp.float32)
    y = y + bo_ref[...]                                       # bias already f32
    o_ref[0] = y.astype(o_ref.dtype)


def attention_pallas(x, wqkv, wo, bo, *, heads, dim_head):
    """x: (B, N, C);  wqkv: (3*H*D, C) torch layout;  wo: (C, H*D);  bo: (C,)."""
    B, N, C = x.shape
    H, D = heads, dim_head
    HD = H * D
    assert wqkv.shape == (3 * HD, C)
    assert wo.shape == (C, HD)
    scale = float(D) ** -0.5
    cdt = x.dtype

    # Glue (outside the kernel): lane-dense, pre-cast weights; fold softmax scale into Wq.
    w3 = wqkv.astype(cdt).reshape(3, HD, C)                   # rows ordered [q | k | v]
    w_q = (w3[0] * jnp.asarray(scale, cdt)).T                 # (C, HD)
    w_kv = jnp.concatenate([w3[1], w3[2]], axis=0).T          # (C, 2HD)
    w_o = wo.astype(cdt).T                                    # (HD, C)
    b_o = bo.reshape(1, C).astype(jnp.float32)

    n_pad, block_q = _choose_tiling(N)
    x_in = x if n_pad == N else jnp.pad(x, ((0, 0), (0, n_pad - N), (0, 0)))
    nq = n_pad // block_q

    kernel = functools.partial(_attention_kernel, heads=H, dim_head=D,
                               block_q=block_q, n_valid=N, n_padded=n_pad)

    out = pl.pallas_call(
        kernel,
        out_shape=jax.ShapeDtypeStruct((B, n_pad, C), x.dtype),
        grid_spec=pltpu.PrefetchScalarGridSpec(
            num_scalar_prefetch=0,
            grid=(B, nq),
            in_specs=[
                pl.BlockSpec((1, n_pad, C), lambda b, qi: (b, 0, 0)),   # full sequence
                pl.BlockSpec((C, HD), lambda b, qi: (0, 0)),            # Wq (scale folded)
                pl.BlockSpec((C, 2 * HD), lambda b, qi: (0, 0)),        # Wk|Wv fused
                pl.BlockSpec((HD, C), lambda b, qi: (0, 0)),            # Wo
                pl.BlockSpec((1, C), lambda b, qi: (0, 0)),             # bias
            ],
            out_specs=pl.BlockSpec((1, block_q, C), lambda b, qi: (b, qi, 0)),
            scratch_shapes=[
                pltpu.VMEM((n_pad, 2 * HD), cdt),    # per-batch K|V projection
                pltpu.VMEM((block_q, HD), cdt),      # merged head outputs
            ],
        ),
        compiler_params=pltpu.CompilerParams(
            # batch axis parallel (v7x 2 TCs); qi carries the per-batch KV scratch.
            dimension_semantics=("parallel", "arbitrary"),
            vmem_limit_bytes=_vmem_limit_bytes(),
        ),
    )(x_in, w_q, w_kv, w_o, b_o)

    return out if n_pad == N else out[:, :N, :]


def attention_reference(x, wqkv, wo, bo, *, heads, dim_head):
    """Pure-JAX reference mirroring the PyTorch module (dropout=0)."""
    B, N, C = x.shape
    H, D = heads, dim_head
    scale = float(D) ** -0.5
    qkv = jnp.einsum('bnc,oc->bno', x, wqkv)                  # (B, N, 3*H*D)
    q, k, v = jnp.split(qkv, 3, axis=-1)

    def to_heads(t):
        return jnp.transpose(t.reshape(B, N, H, D), (0, 2, 1, 3))   # (B, H, N, D)

    q, k, v = map(to_heads, (q, k, v))
    dots = jnp.einsum('bhnd,bhmd->bhnm', q, k) * scale
    attn = jax.nn.softmax(dots, axis=-1)
    out = jnp.einsum('bhnm,bhmd->bhnd', attn, v)
    out = jnp.transpose(out, (0, 2, 1, 3)).reshape(B, N, H * D)
    return jnp.einsum('bni,oi->bno', out, wo) + bo


if __name__ == "__main__":
    # Small shapes consistent with the module's forward: x is (batch, seq, dim).
    B, N = 2, 8
    DIM, HEADS, DIM_HEAD = 32, 4, 16
    INNER = HEADS * DIM_HEAD                                  # 64
    # project_out is True (heads != 1), so to_out = Linear(INNER, DIM) + Dropout(0)

    key = jax.random.PRNGKey(0)
    kx, kqkv, kwo, kbo = jax.random.split(key, 4)
    x = jax.random.normal(kx, (B, N, DIM), dtype=jnp.float32)
    # Deterministic synthetic params (torch Linear layout: (out_features, in_features)).
    wqkv = jax.random.normal(kqkv, (3 * INNER, DIM), dtype=jnp.float32) * 0.05
    wo = jax.random.normal(kwo, (DIM, INNER), dtype=jnp.float32) * 0.05
    bo = jax.random.normal(kbo, (DIM,), dtype=jnp.float32) * 0.05

    y = attention_pallas(x, wqkv, wo, bo, heads=HEADS, dim_head=DIM_HEAD)
    y = jax.block_until_ready(y)

    y_ref = attention_reference(x, wqkv, wo, bo, heads=HEADS, dim_head=DIM_HEAD)
    assert y.shape == (B, N, DIM)
    # Tolerance accounts for the approximate (EUP) reciprocal in the softmax denominator.
    assert jnp.allclose(y, y_ref, atol=2e-3, rtol=2e-3), "mismatch vs reference"

    print("KERNEL_OK")
</pallas_src>

<mosaic_0001>
module attributes {stable_mosaic.version = 11 : i64} {
  func.func @_attention_kernel(%arg0: i32, %arg1: i32, %arg2: memref<1x8x32xf32, #tpu.memory_space<vmem>>, %arg3: memref<32x64xf32, #tpu.memory_space<vmem>>, %arg4: memref<32x128xf32, #tpu.memory_space<vmem>>, %arg5: memref<64x32xf32, #tpu.memory_space<vmem>>, %arg6: memref<1x32xf32, #tpu.memory_space<vmem>>, %arg7: memref<1x8x32xf32, #tpu.memory_space<vmem>>, %arg8: memref<8x128xf32, #tpu.memory_space<vmem>>, %arg9: memref<8x64xf32, #tpu.memory_space<vmem>>) attributes {dimension_semantics = [#tpu.dimension_semantics<parallel>, #tpu.dimension_semantics<arbitrary>], iteration_bounds = array<i64: 2, 1>, scalar_prefetch = 0 : i64, scratch_operands = 2 : i64, tpu.core_type = #tpu.core_type<tc>, window_params = [{transform_indices = @transform_0, window_bounds = array<i64: 1, 8, 32>}, {pipeline_mode = #tpu.pipeline_mode<synchronous>, transform_indices = @transform_1, window_bounds = array<i64: 32, 64>}, {pipeline_mode = #tpu.pipeline_mode<synchronous>, transform_indices = @transform_2, window_bounds = array<i64: 32, 128>}, {pipeline_mode = #tpu.pipeline_mode<synchronous>, transform_indices = @transform_3, window_bounds = array<i64: 64, 32>}, {pipeline_mode = #tpu.pipeline_mode<synchronous>, transform_indices = @transform_4, window_bounds = array<i64: 1, 32>}, {transform_indices = @transform_5, window_bounds = array<i64: 1, 8, 32>}]} {
    %c0_i32 = arith.constant 0 : i32
    %0 = arith.cmpi eq, %arg1, %c0_i32 : i32
    %1 = arith.extui %0 : i1 to i32
    %c0_i32_0 = arith.constant 0 : i32
    %2 = arith.cmpi ne, %1, %c0_i32_0 : i32
    scf.if %2 {
      %c0_48 = arith.constant 0 : index
      %c0_49 = arith.constant 0 : index
      %c0_50 = arith.constant 0 : index
      %80 = vector.load %arg2[%c0_48, %c0_49, %c0_50] : memref<1x8x32xf32, #tpu.memory_space<vmem>>, vector<1x8x32xf32>
      %81 = vector.shape_cast %80 : vector<1x8x32xf32> to vector<8x32xf32>
      %c0_51 = arith.constant 0 : index
      %c0_52 = arith.constant 0 : index
      %82 = vector.load %arg4[%c0_51, %c0_52] : memref<32x128xf32, #tpu.memory_space<vmem>>, vector<32x128xf32>
      %cst_53 = arith.constant dense<0.000000e+00> : vector<8x128xf32>
      %83 = tpu.matmul %81, %82, %cst_53 {dimension_numbers = #tpu.dot_dimension_numbers<[1], [0], [0], [1], [0, 0, 1, 1], [], []>} : vector<8x32xf32>, vector<32x128xf32>, vector<8x128xf32> -> vector<8x128xf32>
      %c0_54 = arith.constant 0 : index
      %c0_55 = arith.constant 0 : index
      %84 = vector.load %arg8[%c0_54, %c0_55] : memref<8x128xf32, #tpu.memory_space<vmem>>, vector<8x128xf32>
      tpu.vector_store %arg8[%c0_54, %c0_55], %83 {strides = array<i32>} : memref<8x128xf32, #tpu.memory_space<vmem>>, vector<8x128xf32>,
    } else {
    }
    %c0 = arith.constant 0 : index
    %c0_1 = arith.constant 0 : index
    %c0_2 = arith.constant 0 : index
    %3 = vector.load %arg2[%c0, %c0_1, %c0_2] : memref<1x8x32xf32, #tpu.memory_space<vmem>>, vector<1x8x32xf32>
    %4 = vector.shape_cast %3 : vector<1x8x32xf32> to vector<8x32xf32>
    %c0_3 = arith.constant 0 : index
    %c0_4 = arith.constant 0 : index
    %5 = vector.load %arg3[%c0_3, %c0_4] : memref<32x64xf32, #tpu.memory_space<vmem>>, vector<32x64xf32>
    %cst = arith.constant dense<0.000000e+00> : vector<8x64xf32>
    %6 = tpu.matmul %4, %5, %cst {dimension_numbers = #tpu.dot_dimension_numbers<[1], [0], [0], [1], [0, 0, 1, 1], [], []>} : vector<8x32xf32>, vector<32x64xf32>, vector<8x64xf32> -> vector<8x64xf32>
    %7 = vector.extract_strided_slice %6 {offsets = [0, 0], sizes = [8, 16], strides = [1, 1]} : vector<8x64xf32> to vector<8x16xf32>
    %c0_5 = arith.constant 0 : index
    %c0_6 = arith.constant 0 : index
    %8 = vector.load %arg8[%c0_5, %c0_6] : memref<8x128xf32, #tpu.memory_space<vmem>>, vector<8x16xf32>
    %c0_7 = arith.constant 0 : index
    %c64 = arith.constant 64 : index
    %9 = vector.load %arg8[%c0_7, %c64] : memref<8x128xf32, #tpu.memory_space<vmem>>, vector<8x16xf32>
    "tpu.trace_start"() <{level = 10 : i32, message = "qd,nd->qn"}> : () -> ()
    %cst_8 = arith.constant dense<0.000000e+00> : vector<8x8xf32>
    %10 = tpu.matmul %7, %8, %cst_8 {dimension_numbers = #tpu.dot_dimension_numbers<[1], [1], [0], [0], [0, 0, 1, 0], [], []>} : vector<8x16xf32>, vector<8x16xf32>, vector<8x8xf32> -> vector<8x8xf32>
    "tpu.trace_stop"() : () -> ()
    %cst_9 = arith.constant dense<0xFF800000> : vector<8xf32>
    %11 = vector.multi_reduction <maximumf>, %10, %cst_9 [1] : vector<8x8xf32> to vector<8xf32>
    %12 = vector.shape_cast %11 : vector<8xf32> to vector<8x1xf32>
    %13 = vector.broadcast %12 : vector<8x1xf32> to vector<8x8xf32>
    %14 = arith.subf %10, %13 : vector<8x8xf32>
    %15 = math.exp %14 : vector<8x8xf32>
    %cst_10 = arith.constant dense<0.000000e+00> : vector<8xf32>
    %16 = vector.multi_reduction <add>, %15, %cst_10 [1] : vector<8x8xf32> to vector<8xf32>
    %17 = vector.shape_cast %16 : vector<8xf32> to vector<8x1xf32>
    %18 = tpu.reciprocal %17 {approx = true} : vector<8x1xf32> -> vector<8x1xf32>
    %19 = vector.broadcast %18 : vector<8x1xf32> to vector<8x8xf32>
    %20 = arith.mulf %15, %19 : vector<8x8xf32>
    %cst_11 = arith.constant dense<0.000000e+00> : vector<8x16xf32>
    %21 = tpu.matmul %20, %9, %cst_11 {dimension_numbers = #tpu.dot_dimension_numbers<[1], [0], [0], [1], [0, 0, 1, 1], [], []>} : vector<8x8xf32>, vector<8x16xf32>, vector<8x16xf32> -> vector<8x16xf32>
    %c0_12 = arith.constant 0 : index
    %c0_13 = arith.constant 0 : index
    %22 = vector.load %arg9[%c0_12, %c0_13] : memref<8x64xf32, #tpu.memory_space<vmem>>, vector<8x16xf32>
    tpu.vector_store %arg9[%c0_12, %c0_13], %21 {strides = array<i32>} : memref<8x64xf32, #tpu.memory_space<vmem>>, vector<8x16xf32>,
    %23 = vector.extract_strided_slice %6 {offsets = [0, 16], sizes = [8, 16], strides = [1, 1]} : vector<8x64xf32> to vector<8x16xf32>
    %c0_14 = arith.constant 0 : index
    %c16 = arith.constant 16 : index
    %24 = vector.load %arg8[%c0_14, %c16] : memref<8x128xf32, #tpu.memory_space<vmem>>, vector<8x16xf32>
    %c0_15 = arith.constant 0 : index
    %c80 = arith.constant 80 : index
    %25 = vector.load %arg8[%c0_15, %c80] : memref<8x128xf32, #tpu.memory_space<vmem>>, vector<8x16xf32>
    "tpu.trace_start"() <{level = 10 : i32, message = "qd,nd->qn"}> : () -> ()
    %cst_16 = arith.constant dense<0.000000e+00> : vector<8x8xf32>
    %26 = tpu.matmul %23, %24, %cst_16 {dimension_numbers = #tpu.dot_dimension_numbers<[1], [1], [0], [0], [0, 0, 1, 0], [], []>} : vector<8x16xf32>, vector<8x16xf32>, vector<8x8xf32> -> vector<8x8xf32>
    "tpu.trace_stop"() : () -> ()
    %cst_17 = arith.constant dense<0xFF800000> : vector<8xf32>
    %27 = vector.multi_reduction <maximumf>, %26, %cst_17 [1] : vector<8x8xf32> to vector<8xf32>
    %28 = vector.shape_cast %27 : vector<8xf32> to vector<8x1xf32>
    %29 = vector.broadcast %28 : vector<8x1xf32> to vector<8x8xf32>
    %30 = arith.subf %26, %29 : vector<8x8xf32>
    %31 = math.exp %30 : vector<8x8xf32>
    %cst_18 = arith.constant dense<0.000000e+00> : vector<8xf32>
    %32 = vector.multi_reduction <add>, %31, %cst_18 [1] : vector<8x8xf32> to vector<8xf32>
    %33 = vector.shape_cast %32 : vector<8xf32> to vector<8x1xf32>
    %34 = tpu.reciprocal %33 {approx = true} : vector<8x1xf32> -> vector<8x1xf32>
    %35 = vector.broadcast %34 : vector<8x1xf32> to vector<8x8xf32>
    %36 = arith.mulf %31, %35 : vector<8x8xf32>
    %cst_19 = arith.constant dense<0.000000e+00> : vector<8x16xf32>
    %37 = tpu.matmul %36, %25, %cst_19 {dimension_numbers = #tpu.dot_dimension_numbers<[1], [0], [0], [1], [0, 0, 1, 1], [], []>} : vector<8x8xf32>, vector<8x16xf32>, vector<8x16xf32> -> vector<8x16xf32>
    %c0_20 = arith.constant 0 : index
    %c16_21 = arith.constant 16 : index
    %38 = vector.load %arg9[%c0_20, %c16_21] : memref<8x64xf32, #tpu.memory_space<vmem>>, vector<8x16xf32>
    tpu.vector_store %arg9[%c0_20, %c16_21], %37 {strides = array<i32>} : memref<8x64xf32, #tpu.memory_space<vmem>>, vector<8x16xf32>,
    %39 = vector.extract_strided_slice %6 {offsets = [0, 32], sizes = [8, 16], strides = [1, 1]} : vector<8x64xf32> to vector<8x16xf32>
    %c0_22 = arith.constant 0 : index
    %c32 = arith.constant 32 : index
    %40 = vector.load %arg8[%c0_22, %c32] : memref<8x128xf32, #tpu.memory_space<vmem>>, vector<8x16xf32>
    %c0_23 = arith.constant 0 : index
    %c96 = arith.constant 96 : index
    %41 = vector.load %arg8[%c0_23, %c96] : memref<8x128xf32, #tpu.memory_space<vmem>>, vector<8x16xf32>
    "tpu.trace_start"() <{level = 10 : i32, message = "qd,nd->qn"}> : () -> ()
    %cst_24 = arith.constant dense<0.000000e+00> : vector<8x8xf32>
    %42 = tpu.matmul %39, %40, %cst_24 {dimension_numbers = #tpu.dot_dimension_numbers<[1], [1], [0], [0], [0, 0, 1, 0], [], []>} : vector<8x16xf32>, vector<8x16xf32>, vector<8x8xf32> -> vector<8x8xf32>
    "tpu.trace_stop"() : () -> ()
    %cst_25 = arith.constant dense<0xFF800000> : vector<8xf32>
    %43 = vector.multi_reduction <maximumf>, %42, %cst_25 [1] : vector<8x8xf32> to vector<8xf32>
    %44 = vector.shape_cast %43 : vector<8xf32> to vector<8x1xf32>
    %45 = vector.broadcast %44 : vector<8x1xf32> to vector<8x8xf32>
    %46 = arith.subf %42, %45 : vector<8x8xf32>
    %47 = math.exp %46 : vector<8x8xf32>
    %cst_26 = arith.constant dense<0.000000e+00> : vector<8xf32>
    %48 = vector.multi_reduction <add>, %47, %cst_26 [1] : vector<8x8xf32> to vector<8xf32>
    %49 = vector.shape_cast %48 : vector<8xf32> to vector<8x1xf32>
    %50 = tpu.reciprocal %49 {approx = true} : vector<8x1xf32> -> vector<8x1xf32>
    %51 = vector.broadcast %50 : vector<8x1xf32> to vector<8x8xf32>
    %52 = arith.mulf %47, %51 : vector<8x8xf32>
    %cst_27 = arith.constant dense<0.000000e+00> : vector<8x16xf32>
    %53 = tpu.matmul %52, %41, %cst_27 {dimension_numbers = #tpu.dot_dimension_numbers<[1], [0], [0], [1], [0, 0, 1, 1], [], []>} : vector<8x8xf32>, vector<8x16xf32>, vector<8x16xf32> -> vector<8x16xf32>
    %c0_28 = arith.constant 0 : index
    %c32_29 = arith.constant 32 : index
    %54 = vector.load %arg9[%c0_28, %c32_29] : memref<8x64xf32, #tpu.memory_space<vmem>>, vector<8x16xf32>
    tpu.vector_store %arg9[%c0_28, %c32_29], %53 {strides = array<i32>} : memref<8x64xf32, #tpu.memory_space<vmem>>, vector<8x16xf32>,
    %55 = vector.extract_strided_slice %6 {offsets = [0, 48], sizes = [8, 16], strides = [1, 1]} : vector<8x64xf32> to vector<8x16xf32>
    %c0_30 = arith.constant 0 : index
    %c48 = arith.constant 48 : index
    %56 = vector.load %arg8[%c0_30, %c48] : memref<8x128xf32, #tpu.memory_space<vmem>>, vector<8x16xf32>
    %c0_31 = arith.constant 0 : index
    %c112 = arith.constant 112 : index
    %57 = vector.load %arg8[%c0_31, %c112] : memref<8x128xf32, #tpu.memory_space<vmem>>, vector<8x16xf32>
    "tpu.trace_start"() <{level = 10 : i32, message = "qd,nd->qn"}> : () -> ()
    %cst_32 = arith.constant dense<0.000000e+00> : vector<8x8xf32>
    %58 = tpu.matmul %55, %56, %cst_32 {dimension_numbers = #tpu.dot_dimension_numbers<[1], [1], [0], [0], [0, 0, 1, 0], [], []>} : vector<8x16xf32>, vector<8x16xf32>, vector<8x8xf32> -> vector<8x8xf32>
    "tpu.trace_stop"() : () -> ()
    %cst_33 = arith.constant dense<0xFF800000> : vector<8xf32>
    %59 = vector.multi_reduction <maximumf>, %58, %cst_33 [1] : vector<8x8xf32> to vector<8xf32>
    %60 = vector.shape_cast %59 : vector<8xf32> to vector<8x1xf32>
    %61 = vector.broadcast %60 : vector<8x1xf32> to vector<8x8xf32>
    %62 = arith.subf %58, %61 : vector<8x8xf32>
    %63 = math.exp %62 : vector<8x8xf32>
    %cst_34 = arith.constant dense<0.000000e+00> : vector<8xf32>
    %64 = vector.multi_reduction <add>, %63, %cst_34 [1] : vector<8x8xf32> to vector<8xf32>
    %65 = vector.shape_cast %64 : vector<8xf32> to vector<8x1xf32>
    %66 = tpu.reciprocal %65 {approx = true} : vector<8x1xf32> -> vector<8x1xf32>
    %67 = vector.broadcast %66 : vector<8x1xf32> to vector<8x8xf32>
    %68 = arith.mulf %63, %67 : vector<8x8xf32>
    %cst_35 = arith.constant dense<0.000000e+00> : vector<8x16xf32>
    %69 = tpu.matmul %68, %57, %cst_35 {dimension_numbers = #tpu.dot_dimension_numbers<[1], [0], [0], [1], [0, 0, 1, 1], [], []>} : vector<8x8xf32>, vector<8x16xf32>, vector<8x16xf32> -> vector<8x16xf32>
    %c0_36 = arith.constant 0 : index
    %c48_37 = arith.constant 48 : index
    %70 = vector.load %arg9[%c0_36, %c48_37] : memref<8x64xf32, #tpu.memory_space<vmem>>, vector<8x16xf32>
    tpu.vector_store %arg9[%c0_36, %c48_37], %69 {strides = array<i32>} : memref<8x64xf32, #tpu.memory_space<vmem>>, vector<8x16xf32>,
    %c0_38 = arith.constant 0 : index
    %c0_39 = arith.constant 0 : index
    %71 = vector.load %arg9[%c0_38, %c0_39] : memref<8x64xf32, #tpu.memory_space<vmem>>, vector<8x64xf32>
    %c0_40 = arith.constant 0 : index
    %c0_41 = arith.constant 0 : index
    %72 = vector.load %arg5[%c0_40, %c0_41] : memref<64x32xf32, #tpu.memory_space<vmem>>, vector<64x32xf32>
    %cst_42 = arith.constant dense<0.000000e+00> : vector<8x32xf32>
    %73 = tpu.matmul %71, %72, %cst_42 {dimension_numbers = #tpu.dot_dimension_numbers<[1], [0], [0], [1], [0, 0, 1, 1], [], []>} : vector<8x64xf32>, vector<64x32xf32>, vector<8x32xf32> -> vector<8x32xf32>
    %c0_43 = arith.constant 0 : index
    %c0_44 = arith.constant 0 : index
    %74 = vector.load %arg6[%c0_43, %c0_44] : memref<1x32xf32, #tpu.memory_space<vmem>>, vector<1x32xf32>
    %75 = vector.broadcast %74 : vector<1x32xf32> to vector<8x32xf32>
    %76 = arith.addf %73, %75 : vector<8x32xf32>
    %c0_45 = arith.constant 0 : index
    %c0_46 = arith.constant 0 : index
    %c0_47 = arith.constant 0 : index
    %77 = vector.load %arg7[%c0_45, %c0_46, %c0_47] : memref<1x8x32xf32, #tpu.memory_space<vmem>>, vector<1x8x32xf32>
    %78 = vector.shape_cast %77 : vector<1x8x32xf32> to vector<8x32xf32>
    %79 = vector.shape_cast %76 : vector<8x32xf32> to vector<1x8x32xf32>
    tpu.vector_store %arg7[%c0_45, %c0_46, %c0_47], %79 {strides = array<i32>} : memref<1x8x32xf32, #tpu.memory_space<vmem>>, vector<1x8x32xf32>,
    return
  }
  func.func @transform_0(%arg0: i32, %arg1: i32) -> (i32, i32, i32) {
    %c0_i32 = arith.constant 0 : i32
    %c0_i32_0 = arith.constant 0 : i32
    %c0_i32_1 = arith.constant 0 : i32
    return %arg0, %c0_i32, %c0_i32_0 : i32, i32, i32
  }
  func.func @transform_1(%arg0: i32, %arg1: i32) -> (i32, i32) {
    %c0_i32 = arith.constant 0 : i32
    %c0_i32_0 = arith.constant 0 : i32
    %c0_i32_1 = arith.constant 0 : i32
    return %c0_i32, %c0_i32_0 : i32, i32
  }
  func.func @transform_2(%arg0: i32, %arg1: i32) -> (i32, i32) {
    %c0_i32 = arith.constant 0 : i32
    %c0_i32_0 = arith.constant 0 : i32
    %c0_i32_1 = arith.constant 0 : i32
    return %c0_i32, %c0_i32_0 : i32, i32
  }
  func.func @transform_3(%arg0: i32, %arg1: i32) -> (i32, i32) {
    %c0_i32 = arith.constant 0 : i32
    %c0_i32_0 = arith.constant 0 : i32
    %c0_i32_1 = arith.constant 0 : i32
    return %c0_i32, %c0_i32_0 : i32, i32
  }
  func.func @transform_4(%arg0: i32, %arg1: i32) -> (i32, i32) {
    %c0_i32 = arith.constant 0 : i32
    %c0_i32_0 = arith.constant 0 : i32
    %c0_i32_1 = arith.constant 0 : i32
    return %c0_i32, %c0_i32_0 : i32, i32
  }
  func.func @transform_5(%arg0: i32, %arg1: i32) -> (i32, i32, i32) {
    %c0_i32 = arith.constant 0 : i32
    %c0_i32_0 = arith.constant 0 : i32
    return %arg0, %arg1, %c0_i32 : i32, i32, i32
  }
}

</mosaic_0001>

<bundles_post_ra>
// kernel: tpu_custom_call.1
= control target key start
LH: loop header
LB: loop body
LE: loop exit
PB: predicated region body
PF: predicated region fallthrough
CT: control target
= control target key end

     0   :  { %10 = vsyncpa [#allocation5], 0  ;;  %s1112_s0 = inlined_call_operand.vmem [shape: f32[2,8,32], index: 0, kind: input, shape index: {}]   ;;  %s1113_s1 = inlined_call_operand.vmem [shape: f32[32,64], index: 1, kind: input, shape index: {}]   ;;  %s1114_s2 = inlined_call_operand.vmem [shape: f32[32,128], index: 2, kind: input, shape index: {}]   ;;  %s1115_s3 = inlined_call_operand.vmem [shape: f32[64,32], index: 3, kind: input, shape index: {}]   ;;  %s1116_s4 = inlined_call_operand.vmem [shape: f32[1,32], index: 4, kind: input, shape index: {}]   ;;  %s1117_s5 = inlined_call_operand.hbm [shape: f32[2,8,32], index: 5, kind: output, shape index: {}]  }
   0x1   :  { %12 = vsyncpa [#allocation5 + $0x1], 0  ;;  %s928_s18 = smov 0   ;;  %s930_s19 = smov 0  }
   0x2   :  { %s932_s20 = smov 0   ;;  %s934_s21 = smov 0  }
   0x3   :  { %s936_s22 = smov 0   ;;  %s938_s23 = smov 0  }
   0x4 LB: > { %s706_s24 = sadd.s32 4294967295, %s889_s23   ;;  %s707_s25 = sadd.s32 4294967294, %s889_s23   ;;  %s889_s23 = sphi %s938_s23, %s18_s23   ;;  %s885_s22 = sphi %s936_s22, %s1124_s22   ;;  %s881_s21 = sphi %s934_s21, %s1123_s21   ;;  %s877_s20 = sphi %s932_s20, %s1122_s20   ;;  %s873_s19 = sphi %s930_s19, %s1121_s19   ;;  %s869_s18 = sphi %s928_s18, %s1120_s18  }
   0x5   : > { %s30_s26 = sadd.s32 1, %s885_s22  ;;  %s149_s27 = sadd.s32 1, %s877_s20 }
   0x6   : > { %p32_p0 = scmp.ge.s32.totalorder %s30_s26, 2  ;;  %p159_p1 = scmp.ne.s32.totalorder %s877_s20, %s873_s19 }
   0x7   : > { %p160_p2 = scmp.eq.s32.totalorder %s706_s24, 1  ;;  %p165_p3 = scmp.ne.s32.totalorder %s873_s19, %s869_s18 }
   0x8   : > { %s1126_s26 = smov (%p32_p0, %s30_s26), 0  ;;  %p166_p5 = scmp.eq.s32.totalorder %s707_s25, 1 }
   0x9   : > { %p968_p4 = por %p160_p2, %p159_p1  ;;  %s144_s29 = ssub.s32 %s885_s22, %s1126_s26 }
   0xa   : > { %p710_p6 = scmp.ge.s32.totalorder %s889_s23, 1  ;;  %p147_p7 = scmp.eq.s32.totalorder %s144_s29, 0 }
   0xb   : > { %p975_p8 = por %p166_p5, %p165_p3  ;;  %p203_p9 = scmp.lt.s32.totalorder %s889_s23, 3 }
   0xc   : > { %s981_s6 = scalar_select %p147_p7, %s877_s20, %s149_s27  }
   0xd   : > { %p204_p10 = pnand %p710_p6, %p203_p9 }
   0xe   : > { %p230_p11 = scmp.lt.s32.totalorder (!%p204_p10), %s881_s21, 1  ;;  %s892_s14 = smov (!%p204_p10), 112  }
   0xf   : > { %207 = sbr.rel (%p204_p10) target bundleno = 1348 (0x544), region = 40  ;;  %s893_s15 = smov (!%p204_p10), 96  }
  0x10   : > { %s895_s17 = smov (!%p204_p10), 16   ;;  %s896_s24 = smov (!%p204_p10), 48  }
  0x11   : > { %s227_s29 = sand.u32 (!%p204_p10), 1, %s873_s19   ;;  %s729_s8 = sshll.u32 (!%p204_p10), %s881_s21, 3 }
  0x12   : > { %s711_s7 = sshll.u32 (!%p204_p10), %s227_s29, 3  ;;  %s633_s11 = scalar_lea.hbm (!%p204_p10), %s1117_s5, %s729_s8 }
  0x14   : > { %v242_v0 = vld [vmem:[%s1114_s2 + $0x18] sm:$0xff]  ;;  %v241_v1 = vld [vmem:[%s1114_s2 + $0x10] sm:$0xff]  ;;  %v240_v2 = vld [vmem:[%s1114_s2 + $0x8] sm:$0xff]  ;;  %s231_s13 = scalar_select %p230_p11, %s881_s21, 1  ;;  %vm243_vm0 = vcmask 261120   ;;  %vm298_vm1 = vcmask 130048  }
  0x15   : > { %259 = vmatpush.msra.mxu1 %v242_v0  ;;  %v239_v3 = vld [vmem:[%s1114_s2] sm:$0xff]  ;;  %v272_v5 = vld [vmem:[%s1113_s1 + $0x18] sm:$0xff]  ;;  %v271_v6 = vld [vmem:[%s1113_s1 + $0x10] sm:$0xff]  ;;  %vm325_vm2 = vcmask 64512   ;;  %vm435_vm3 = vcmask 261248   ;;  %vm508_vm4 = vcmask 392448  }
  0x16   : > { %s712_s16 = sshll.u32 %s231_s13, 3  ;;  %v270_v7 = vld [vmem:[%s1113_s1 + $0x8] sm:$0xff]  ;;  %v269_v8 = vld [vmem:[%s1113_s1] sm:$0xff]  ;;  %s891_s13 = smov 64   ;;  %vm581_vm5 = vcmask 523648   ;;  %vm596_vm6 = vcmask 523264  }
  0x17   : > { %260 = vmatpush.msra.mxu1 %v241_v1  ;;  %s233_s25 = scalar_lea.vmem %s1112_s0, %s712_s16  ;;  %s894_s16 = smov 80   ;;  %v591_v1 = vld [vmem:[%s1115_s3 + $0x38] sm:$0xff] }
  0x18   : > { %v238_v4 = vld [vmem:[%s233_s25] sm:$0xff]  ;;  %s897_s25 = smov 32  }
  0x19   : > { %261 = vmatpush.msra.mxu1 %v240_v2  ;;  %v590_v2 = vld [vmem:[%s1115_s3 + $0x30] sm:$0xff] }
  0x1b   : > { %262 = vmatpush.msra.mxu1 %v239_v3  ;;  %v589_v3 = vld [vmem:[%s1115_s3 + $0x28] sm:$0xff] }
  0x1c   : > { %713 = vmatmul.msk.f32.vlgmr.msra.gmra.mxu1 %vm243_vm0, %v238_v4 }
  0x1d   : > { %289 = vmatpush.msrb.mxu1 %v272_v5  ;;  %v588_v5 = vld [vmem:[%s1115_s3 + $0x20] sm:$0xff] }
  0x1f   : > { %290 = vmatpush.msrb.mxu1 %v271_v6  ;;  %v587_v6 = vld [vmem:[%s1115_s3 + $0x18] sm:$0xff] }
  0x21   : > { %291 = vmatpush.msrb.mxu1 %v270_v7  ;;  %v586_v7 = vld [vmem:[%s1115_s3 + $0x10] sm:$0xff] }
  0x23   : > { %292 = vmatpush.msrb.mxu1 %v269_v8  ;;  %v585_v8 = vld [vmem:[%s1115_s3 + $0x8] sm:$0xff] }
  0x24   : > { %714 = vmatmul.msk.f32.vlgmr.msrb.gmra.mxu1 %vm243_vm0, %v238_v4 }
  0x99   : > { %v1014_v9 = vpop.f32.mrf.mxu1 }
  0x9a   : > { %337 = vrot.lane.b32.xlu1 %v1014_v9, %s891_s13  ;;  %715 = vmatpush.xpose.msk.msra.mxu2 %vm298_vm1, %v1014_v9 }
  0xa1   : > { %v294_v10 = vpop.f32.mrf.mxu1 }
  0xa2   : > { %368 = vrot.lane.b32.xlu1 %v1014_v9, %s892_s14  ;;  %365 = vrot.lane.b32.xlu2 %v294_v10, %s892_s14  ;;  %s229_s14 = scalar_lea.vmem [#allocation4], %s711_s7  ;;  %s831_s7 = scalar_lea.hbm %s1117_s5, 16 }
  0xa3   : > { %716 = vmatmul.msk.f32.vlgmr.msra.gmra.mxu2 %vm298_vm1, %v294_v10 }
  0xaa   : > { %441 = vrot.lane.b32.xlu1 %v1014_v9, %s893_s15  ;;  %514 = vrot.lane.b32.xlu2 %v1014_v9, %s894_s16 }
  0xb2   : > { %438 = vrot.lane.b32.xlu2 %v294_v10, %s893_s15  ;;  %s635_s15 = sshll.u32 %s229_s14, 4  ;;  %s636_s15 = int_to_ptr.vmem [resolvable:$true] %s635_s15 }
  0xfc   : > { %v366_v11 = vpop.permute.xlu2 %365 }
 0x104   : > { %v515_v14 = vpop.permute.xlu2 %514 }
 0x10c   : > { %v338_v12 = vpop.permute.xlu1 %337  ;;  %v439_v16 = vpop.permute.xlu2 %438 }
 0x10d   : > { %358 = vmatpush.msra.mxu3 %v338_v12 }
 0x114   : > { %v369_v13 = vpop.permute.xlu1 %368 }
 0x115   : > { %718 = vmatpush.xpose.msk.msrb.mxu3 %vm298_vm1, %v369_v13  ;;  %v794_v13 = vld [vmem:[%s1116_s4] ss:$0 sm:$0xff] }
 0x11c   : > { %v442_v15 = vpop.permute.xlu1 %441 }
 0x11d   : > { %721 = vmatpush.xpose.msk.msra.mxu0 %vm298_vm1, %v442_v15 }
 0x120   : > { %722 = vmatmul.msk.f32.vlgmr.msra.gmra.mxu0 %vm298_vm1, %v439_v16 }
 0x121   : > { %608 = vmatpush.msrb.mxu0 %v591_v1 }
 0x123   : > { %609 = vmatpush.msrb.mxu0 %v590_v2 }
 0x125   : > { %610 = vmatpush.msrb.mxu0 %v589_v3 }
 0x126   : > { %v322_v17 = vpop.f32.mrf.mxu2 }
 0x127   : > { %v326_v18 = vsel %vm325_vm2, %v322_v17, -inf  ;;  %611 = vmatpush.msrb.mxu0 %v588_v5 }
 0x128   : > { %327 = vmax.xlane.f32.xlu0 %v326_v18 }
 0x129   : > { %612 = vmatpush.msrb.mxu0 %v587_v6 }
 0x12b   : > { %613 = vmatpush.msrb.mxu0 %v586_v7 }
 0x12d   : > { %614 = vmatpush.msrb.mxu0 %v585_v8 }
 0x19b   : > { %v328_v19 = vpop.xlane.xlu0 %327 }
 0x19c   : > { %v329_v20 = vsub.f32 %v322_v17, %v328_v19 }
 0x19d   : > { %v464_v24 = vpop.f32.mrf.mxu0 }
 0x19e   : > { %v330_v21 = vmul.f32 1.442695, %v329_v20  ;;  %v467_v25 = vsel %vm325_vm2, %v464_v24, -inf }
 0x1a0   : > { %795 = vpow2.f32 %v330_v21 }
 0x1a6   : > { %v796_v22 = vpop.eup %795 }
 0x1a7   : > { %v332_v23 = vsel %vm325_vm2, %v796_v22, 0.0 }
 0x1a8   : > { %333 = vadd.xlane.f32.xlu0 %v332_v23 }
 0x1bc   : > { %511 = vrot.lane.b32.xlu0 %v294_v10, %s894_s16  ;;  %s637_s16 = sshll.u32 %s633_s11, 4  ;;  %s638_s16 = int_to_ptr.hbm [resolvable:$true] %s637_s16 }
 0x1bd   : > { %s825_s21 = sshra.s32 %s638_s16, 4  ;;  %s826_s21 = int_to_ptr.hbm [resolvable:$true] %s825_s21 }
 0x1be   : > { %p832_p1 = scmp.lt.s32.totalorder %s826_s21, %s1117_s5 }
 0x1e6   : > { %468 = vmax.xlane.f32.xlu0 %v467_v25 }
 0x1fa   : > { %551 = vrot.lane.b32.xlu0 %v1014_v9, %s895_s17 }
 0x21b   : > { %v334_v26 = vpop.xlane.xlu0 %333 }
 0x21c   : > { %797 = vrcp.f32 %v334_v26 }
 0x222   : > { %v798_v27 = vpop.eup %797 }
 0x223   : > { %v336_v28 = vmul.f32 %v798_v27, %v796_v22 }
 0x225   : > { %717 = vmatmul.msk.f32.vlgmr.msra.gmra.mxu3 %vm325_vm2, %v336_v28 }
 0x226   : > { %724 = vmatpush.xpose.msk.msra.mxu3 %vm298_vm1, %v515_v14 }
 0x22d   : > { %719 = vmatmul.msk.f32.vlgmr.msrb.gmra.mxu3 %vm298_vm1, %v366_v11 }
 0x22e   : > { %v512_v29 = vpop.permute.xlu0 %511 }
 0x235   : > { %725 = vmatmul.msk.f32.vlgmr.msra.gmra.mxu3 %vm298_vm1, %v512_v29 }
 0x259   : > { %v469_v30 = vpop.xlane.xlu0 %468 }
 0x25a   : > { %v470_v31 = vsub.f32 %v464_v24, %v469_v30 }
 0x25c   : > { %v471_v33 = vmul.f32 1.442695, %v470_v31 }
 0x25e   : > { %799 = vpow2.f32 %v471_v33 }
 0x264   : > { %v800_v36 = vpop.eup %799 }
 0x265   : > { %v473_v39 = vsel %vm325_vm2, %v800_v36, 0.0 }
 0x26c   : > { %v552_v56 = vpop.permute.xlu0 %551 }
 0x2a8   : > { %v360_v32 = vpop.f32.mrf.mxu3 }
 0x2a9   : > { %363 = vst.msk [vmem:[#allocation3] sm:$0xff] %vm298_vm1, %v360_v32 }
 0x2b0   : > { %v391_v34 = vpop.f32.mrf.mxu3 }
 0x2b1   : > { %v394_v35 = vsel %vm325_vm2, %v391_v34, -inf }
 0x2b2   : > { %395 = vmax.xlane.f32.xlu1 %v394_v35 }
 0x2b8   : > { %v537_v37 = vpop.f32.mrf.mxu3 }
 0x2b9   : > { %v540_v38 = vsel %vm325_vm2, %v537_v37, -inf }
 0x2ba   : > { %541 = vmax.xlane.f32.xlu2 %v540_v38  ;;  %474 = vadd.xlane.f32.xlu1 %v473_v39 }
 0x325   : > { %v396_v40 = vpop.xlane.xlu1 %395 }
 0x326   : > { %v397_v41 = vsub.f32 %v391_v34, %v396_v40 }
 0x328   : > { %v398_v42 = vmul.f32 1.442695, %v397_v41 }
 0x32a   : > { %801 = vpow2.f32 %v398_v42 }
 0x32d   : > { %v542_v43 = vpop.xlane.xlu2 %541  ;;  %v475_v50 = vpop.xlane.xlu1 %474 }
 0x32e   : > { %v543_v44 = vsub.f32 %v537_v37, %v542_v43 }
 0x330   : > { %v802_v45 = vpop.eup %801  ;;  %v544_v46 = vmul.f32 1.442695, %v543_v44 }
 0x331   : > { %v400_v47 = vsel %vm325_vm2, %v802_v45, 0.0 }
 0x332   : > { %803 = vpow2.f32 %v544_v46  ;;  %401 = vadd.xlane.f32.xlu2 %v400_v47 }
 0x338   : > { %v804_v48 = vpop.eup %803 }
 0x339   : > { %v546_v49 = vsel %vm325_vm2, %v804_v48, 0.0 }
 0x33a   : > { %547 = vadd.xlane.f32.xlu1 %v546_v49 }
 0x34a   : > { %405 = vrot.lane.b32.xlu2 %v1014_v9, %s896_s24 }
 0x353   : > { %478 = vrot.lane.b32.xlu1 %v1014_v9, %s897_s25  ;;  %v584_v9 = vld [vmem:[%s1115_s3] sm:$0xff] }
 0x354   : > { %615 = vmatpush.msrb.mxu0 %v584_v9 }
 0x3a5   : > { %v402_v51 = vpop.xlane.xlu2 %401 }
 0x3a6   : > { %805 = vrcp.f32 %v402_v51 }
 0x3ac   : > { %v806_v52 = vpop.eup %805 }
 0x3ad   : > { %v406_v53 = vpop.permute.xlu2 %405  ;;  %v548_v54 = vpop.xlane.xlu1 %547  ;;  %v404_v55 = vmul.f32 %v806_v52, %v802_v45 }
 0x3ae   : > { %807 = vrcp.f32 %v548_v54  ;;  %426 = vmatpush.msrb.mxu2 %v406_v53 }
 0x3af   : > { %720 = vmatmul.msk.f32.vlgmr.msrb.gmra.mxu2 %vm325_vm2, %v404_v55  ;;  %809 = vrcp.f32 %v475_v50 }
 0x3b0   : > { %572 = vmatpush.msra.mxu2 %v552_v56 }
 0x3b4   : > { %v808_v57 = vpop.eup %807 }
 0x3b5   : > { %v550_v58 = vmul.f32 %v808_v57, %v804_v48  ;;  %v810_v59 = vpop.eup %809 }
 0x3b6   : > { %v477_v60 = vmul.f32 %v810_v59, %v800_v36 }
 0x3b7   : > { %726 = vmatmul.msk.f32.vlgmr.msra.gmra.mxu2 %vm325_vm2, %v550_v58 }
 0x3c5   : > { %v479_v61 = vpop.permute.xlu1 %478 }
 0x3c6   : > { %499 = vmatpush.msra.mxu1 %v479_v61 }
 0x3c7   : > { %723 = vmatmul.msk.f32.vlgmr.msra.gmra.mxu1 %vm325_vm2, %v477_v60 }
 0x432   : > { %v428_v62 = vpop.f32.mrf.mxu2 }
 0x433   : > { %432 = vrot.lane.b32.xlu2 %v428_v62, %s895_s17  ;;  %s622_s17 = scalar_lea.sflag [#allocation5], %s227_s29 }
 0x43a   : > { %v574_v63 = vpop.f32.mrf.mxu2 }
 0x43b   : > { %578 = vrot.lane.b32.xlu2 %v574_v63, %s896_s24  ;;  %s827_s24 = scalar_lea.hbm %s826_s21, 8 }
 0x43c   : > { %p828_p12 = scmp.ne.s32.totalorder %s826_s21, %s827_s24  ;;  %p833_p2 = scmp.lt.s32.totalorder %s831_s7, %s827_s24 }
 0x43e   : > { %p829_p13 = pnand %p828_p12, %p968_p4  ;;  %p834_p3 = por %p833_p2, %p832_p1 }
 0x440   : > { %p830_p0 = pneg %p829_p13 }
 0x442   : > { %p835_p5 = pnand %p834_p3, %p830_p0 }
 0x444   : > { %v501_v0 = vpop.f32.mrf.mxu1 }
 0x445   : > { %505 = vrot.lane.b32.xlu0 %v501_v0, %s897_s25 }
 0x48d   : > { %v433_v4 = vpop.permute.xlu2 %432 }
 0x48e   : > { %436 = vst.msk [vmem:[#allocation3] sm:$0xff] %vm435_vm3, %v433_v4 }
 0x495   : > { %v579_v11 = vpop.permute.xlu2 %578 }
 0x4b7   : > { %v506_v10 = vpop.permute.xlu0 %505 }
 0x4b8   : > { %509 = vst.msk [vmem:[#allocation3] sm:$0xff] %vm508_vm4, %v506_v10 }
 0x4b9   : > { %582 = vst.msk [vmem:[#allocation3] sm:$0xff] %vm581_vm5, %v579_v11 }
 0x4c0   : > { %v583_v12 = vld [vmem:[#allocation3] sm:$0xff] }
 0x4c1   : > { %727 = vmatmul.msk.f32.vlgmr.msrb.gmra.mxu0 %vm596_vm6, %v583_v12 }
 0x53e   : > { %v617_v14 = vpop.f32.mrf.mxu0 }
 0x53f   : > { %v618_v15 = vadd.f32 %v794_v13, %v617_v14 }
 0x541   : > { %620 = vst.msk [vmem:[%s229_s14] sm:$0xff] %vm243_vm0, %v618_v15 }
 0x542   : > { %838 = shalt.err (!%p835_p5)
}
 0x543   : > { %732 = dma.vmem_to_hbm [thread:$0]  (%p968_p4), %s636_s15, 128, %s638_s16, %s622_s17  }
 0x544 PF: > { %p738_p6 = scmp.ge.s32.totalorder %s889_s23, 2  ;;  %s649_s29 = sand.u32 1, %s869_s18  }
 0x545   : > { %s650_s10 = scalar_lea.sflag [#allocation5], %s649_s29 }
 0x546   : > { %p735_p7 = pnand %p738_p6, %p975_p8 }
 0x548   : > { %p736_p9 = pneg %p735_p7 }
 0x54a   : > { %864 = dma.done.wait (%p736_p9), %s650_s10, 128  }
 0x54b   : > { %866 = vsyncadd (%p736_p9), %s650_s10, 4294967168  ;;  %s18_s23 = sadd.s32 1, %s889_s23   ;;  %s1120_s18 = smov %s873_s19 }
 0x54c   : > { %p15_p10 = scmp.ge.s32.totalorder %s18_s23, 4   ;;  %s1121_s19 = smov %s877_s20 }
 0x54d   : > { %s1122_s20 = smov %s981_s6  ;;  %s1123_s21 = smov %s885_s22 }
 0x54e   : > { %s1124_s22 = smov %s1126_s26  ;;  %17 = sbr.rel (!%p15_p10) target bundleno = 4 (0x4), region = 79 }
 0x553   :  { %656 = vsyncpa [#allocation5], 1 }
 0x554   :  { %658 = vsyncpa [#allocation5 + $0x1], 1 }

</bundles_post_ra>
